<compile_context>
chip_gen: v5e
topology: v5e:2x2
jax: 0.10.0
libtpu: 0.0.40
codegen_flags: <defaults>
</compile_context>

<pallas_src>
import functools
import math

import jax
import jax.numpy as jnp
from jax.experimental import pallas as pl
from jax.experimental.pallas import tpu as pltpu


def _round_up(n, m):
    return ((n + m - 1) // m) * m


# ----------------------------------------------------------------------------
# Parameter setup (deterministic, plain JAX) -- mirrors fbp_filter_op and the
# discretized adjoint of the parallel-beam 2D ray transform. Runs ONCE.
# ----------------------------------------------------------------------------
def fbp_filter_matrix(n_det, filter_type="Hann", frequency_scaling=1.0,
                      det_spacing=1.0, angle_range=math.pi, padding=True):
    """Dense matrix equivalent of the Hann-windowed ramp Fourier multiplier applied
    along the detector axis (rows = output detector bin, cols = input detector bin)."""
    m = 2 * n_det if padding else n_det
    freqs = jnp.fft.fftfreq(m, d=det_spacing)            # cycles / unit length
    abs_freq = 2.0 * jnp.pi * jnp.abs(freqs)             # angular frequency |xi|
    norm_freq = abs_freq / jnp.max(abs_freq)
    if filter_type == "Hann":
        window = 0.5 * (1.0 + jnp.cos(jnp.pi * norm_freq / frequency_scaling))
    elif filter_type == "Ram-Lak":
        window = jnp.ones_like(norm_freq)
    else:
        raise ValueError(f"unsupported filter_type {filter_type!r}")
    window = jnp.where(norm_freq <= frequency_scaling, window, 0.0)
    # TODO(synk): ODL folds additional geometry-dependent constants into the filter;
    # here we use the classical parallel-beam 1/(2*angle_range) scaling.
    filt_freq = abs_freq * window / (2.0 * angle_range)
    h = jnp.real(jnp.fft.ifft(filt_freq))                # spatial (circular) kernel, length m
    d_out = jnp.arange(n_det)[:, None]
    d_in = jnp.arange(n_det)[None, :]
    filt_mat = h[(d_out - d_in) % m]                     # (n_det, n_det)
    return filt_mat.astype(jnp.float32)


def backprojection_matrix(n_angles, n_det, im_h, im_w):
    """Dense matrix of the parallel-beam 2D back-projection (adjoint of the ray
    transform, pixel-driven with linear interpolation on the detector).
    Returns shape (n_angles * n_det, im_h * im_w)."""
    xs = (jnp.arange(im_w, dtype=jnp.float32) + 0.5) / im_w * 2.0 - 1.0
    ys = (jnp.arange(im_h, dtype=jnp.float32) + 0.5) / im_h * 2.0 - 1.0
    yy, xx = jnp.meshgrid(ys, xs, indexing="ij")                          # (H, W)
    thetas = jnp.arange(n_angles, dtype=jnp.float32) * (jnp.pi / n_angles)
    dtheta = jnp.pi / n_angles
    s_max = math.sqrt(2.0)
    ds = 2.0 * s_max / n_det
    s0 = -s_max + 0.5 * ds
    t = (xx[None] * jnp.cos(thetas)[:, None, None]
         + yy[None] * jnp.sin(thetas)[:, None, None])                      # (A, H, W)
    u = (t - s0) / ds
    d0 = jnp.floor(u).astype(jnp.int32)
    w1 = u - d0.astype(jnp.float32)
    w0 = 1.0 - w1
    p = im_h * im_w
    d0f = d0.reshape(n_angles, p)
    w0f = w0.reshape(n_angles, p)
    w1f = w1.reshape(n_angles, p)
    d_idx = jnp.arange(n_det)
    oh0 = (d_idx[None, :, None] == d0f[:, None, :]).astype(jnp.float32)         # (A, D, P)
    oh1 = (d_idx[None, :, None] == (d0f + 1)[:, None, :]).astype(jnp.float32)   # (A, D, P)
    bp = oh0 * w0f[:, None, :] + oh1 * w1f[:, None, :]
    # TODO(synk): ODL's adjoint also weights by the range/domain cell-volume ratio;
    # we apply the classical FBP angle-spacing weight.
    bp = bp * dtheta
    return bp.reshape(n_angles * n_det, p).astype(jnp.float32)


def folded_fbp_matrix(filt_mat, bp_mat, n_angles, n_det):
    """Fold the detector filter into the back-projection matrix:
    bp_filt[a*D + d, p] = sum_e filt_mat[e, d] * bp[a*D + e, p],
    so that  FBP(x) = x.reshape(BC, A*D) @ bp_filt."""
    p = bp_mat.shape[-1]
    bp3 = bp_mat.reshape(n_angles, n_det, p)
    bp_filt = jnp.einsum("ed,aep->adp", filt_mat, bp3,
                         precision=jax.lax.Precision.HIGHEST)
    return bp_filt.reshape(n_angles * n_det, p).astype(jnp.float32)
    # TODO(synk): structural win for realistic CT sizes -- the adjoint has ~2 nonzeros
    # per (angle, pixel); a pixel-driven gather kernel (scalar-prefetched detector
    # indices + 2 interpolation weights) instead of this dense fold would cut HBM
    # traffic and FLOPs by ~D/2 and is required once the dense matrix no longer fits HBM.


# ----------------------------------------------------------------------------
# Tiling plan + one-time weight preparation (hoisted out of the per-call path).
# ----------------------------------------------------------------------------
def plan_fbp_tiles(k_dim, p_dim, *, tk_target=1024, tp_target=4096):
    """Pick MXU/DMA-friendly tile sizes (multiples of 128) and padded extents.
    Large bp tiles (up to 8 MiB bf16) keep the per-grid-step overhead negligible."""
    tk = min(tk_target, _round_up(k_dim, 128))
    tp = min(tp_target, _round_up(p_dim, 128))
    k_pad = _round_up(k_dim, tk)
    p_pad = _round_up(p_dim, tp)
    # v7x megacore: prefer an even number of P tiles (>= 2) so both TensorCores get
    # equal work when the "parallel" axis is sharded across cores.
    n_p = p_pad // tp
    if n_p > 1 and n_p % 2 == 1 and tp >= 256:
        tp = tp // 2
        p_pad = _round_up(p_dim, tp)
    return tk, tp, k_pad, p_pad


def prepare_fbp_weights(bp_filt, k_pad, p_pad, compute_dtype=jnp.bfloat16):
    """Cast + zero-pad the folded filter/back-projection weights ONCE at setup.
    The per-call hot path never re-reads/re-writes this (K, P) matrix."""
    k_dim, p_dim = bp_filt.shape
    bp_c = jnp.asarray(bp_filt).astype(compute_dtype)
    if k_pad != k_dim or p_pad != p_dim:
        bp_c = jnp.pad(bp_c, ((0, k_pad - k_dim), (0, p_pad - p_dim)))
    # TODO(synk): quantize below bf16 (int8 on v5e/v6e MXU, fp8 e4m3 on v7x) with
    # per-tile scales applied as one VPU multiply on the f32 accumulator at k == last;
    # halves HBM traffic on the dominant streamed operand.
    return bp_c


# ----------------------------------------------------------------------------
# Pallas kernel: single pipelined matmul, K-reduction over the grid, no scratch.
# ----------------------------------------------------------------------------
def _fbp_matmul_kernel(x_ref, bp_ref, out_ref, *, tk):
    # x_ref:   (BC, K_pad) compute-dtype sinogram, VMEM-resident across the whole grid
    #          (constant index_map) -> no per-step DMA; sliced in-kernel with pl.ds.
    # bp_ref:  (tk, tp)    compute-dtype folded filter+back-projection tile (streamed).
    # out_ref: (BC, tp)    f32 output tile; its block index is K-invariant so it stays
    #          in VMEM across the reduction -> accumulate into it directly (no acc_ref).
    k = pl.program_id(1)
    start = pl.multiple_of(k * tk, 128)
    contrib = jnp.dot(x_ref[:, pl.ds(start, tk)], bp_ref[...],
                      preferred_element_type=jnp.float32)

    @pl.when(k == 0)
    def _():
        out_ref[...] = contrib

    @pl.when(k > 0)
    def _():
        out_ref[...] += contrib


def fbp_forward(x, bp_padded, im_h, im_w, *, tk, tp, compute_dtype=jnp.bfloat16):
    """x: (B, C, n_angles, n_det) -> (B, C, im_h, im_w).
    bp_padded: output of prepare_fbp_weights (already cast + padded, shape (k_pad, p_pad))."""
    b, c, n_angles, n_det = x.shape
    bc = b * c
    k_dim = n_angles * n_det
    p_dim = im_h * im_w
    k_pad, p_pad = bp_padded.shape
    assert k_pad % tk == 0 and p_pad % tp == 0

    # Only the (small) sinogram is cast/padded per call; the big bp matrix is not touched.
    x_flat = x.reshape(bc, k_dim).astype(compute_dtype)
    if k_pad != k_dim:
        x_flat = jnp.pad(x_flat, ((0, 0), (0, k_pad - k_dim)))

    grid = (p_pad // tp, k_pad // tk)   # (P tiles [parallel], K tiles [arbitrary, last])

    itemsize = jnp.dtype(compute_dtype).itemsize
    cost = pl.CostEstimate(
        flops=2 * bc * k_pad * p_pad,
        transcendentals=0,
        bytes_accessed=(bc * k_pad + k_pad * p_pad) * itemsize + bc * p_pad * 4,
    )

    # VMEM budget: double-buffered bp tiles dominate; keep under v7x's 64 MiB/TC.
    vmem_needed = (2 * tk * tp * itemsize        # bp tile, double-buffered
                   + 2 * bc * tp * 4             # f32 output tile (conservative x2)
                   + 2 * bc * k_pad * itemsize   # resident x (conservative x2)
                   + (2 << 20))                  # slack
    vmem_limit = int(min(max(vmem_needed, 32 << 20), 56 << 20))

    out = pl.pallas_call(
        functools.partial(_fbp_matmul_kernel, tk=tk),
        out_shape=jax.ShapeDtypeStruct((bc, p_pad), jnp.float32),
        grid=grid,
        in_specs=[
            pl.BlockSpec((bc, k_pad), lambda j, kk: (0, 0)),   # x: VMEM-resident
            pl.BlockSpec((tk, tp), lambda j, kk: (kk, j)),     # bp: streamed
        ],
        out_specs=pl.BlockSpec((bc, tp), lambda j, kk: (0, j)),
        compiler_params=pltpu.CompilerParams(
            dimension_semantics=("parallel", "arbitrary"),
            vmem_limit_bytes=vmem_limit,
        ),
        cost_estimate=cost,
    )(x_flat, bp_padded)

    return out[:, :p_dim].reshape(b, c, im_h, im_w)


# ----------------------------------------------------------------------------
if __name__ == "__main__":
    B, C = 2, 4
    N_ANGLES, N_DET = 8, 16
    IM_H = IM_W = 16

    key = jax.random.PRNGKey(0)
    x = jax.random.normal(key, (B, C, N_ANGLES, N_DET), dtype=jnp.float32)

    # --- one-time setup (deterministic, plain JAX; hoisted out of the hot path) ---
    filt_mat = fbp_filter_matrix(N_DET, filter_type="Hann", frequency_scaling=1.0)
    bp_mat = backprojection_matrix(N_ANGLES, N_DET, IM_H, IM_W)
    bp_filt = folded_fbp_matrix(filt_mat, bp_mat, N_ANGLES, N_DET)

    k_dim = N_ANGLES * N_DET
    p_dim = IM_H * IM_W
    tk, tp, k_pad, p_pad = plan_fbp_tiles(k_dim, p_dim)
    bp_padded = prepare_fbp_weights(bp_filt, k_pad, p_pad)       # padded bf16, ONCE
    bp_padded = jax.block_until_ready(bp_padded)

    # --- hot path: single Pallas matmul call ---
    out = fbp_forward(x, bp_padded, IM_H, IM_W, tk=tk, tp=tp)
    out = jax.block_until_ready(out)

    # Reference 1: identical bf16-quantized operands, f32 math -> checks the kernel itself.
    bc = B * C
    x_q = x.reshape(bc, k_dim).astype(jnp.bfloat16).astype(jnp.float32)
    bp_q = bp_filt.astype(jnp.bfloat16).astype(jnp.float32)
    ref_q = jnp.dot(x_q, bp_q, precision=jax.lax.Precision.HIGHEST
                    ).reshape(B, C, IM_H, IM_W)

    # Reference 2: full-precision original pipeline (filter, then back-project)
    # -> checks the forward-pass semantics of the module.
    xf = jnp.einsum("bcad,ed->bcae", x, filt_mat,
                    precision=jax.lax.Precision.HIGHEST)
    ref_f32 = jnp.einsum("bcae,aep->bcp", xf,
                         bp_mat.reshape(N_ANGLES, N_DET, p_dim),
                         precision=jax.lax.Precision.HIGHEST
                         ).reshape(B, C, IM_H, IM_W)

    def rel_err(a, b):
        return float(jnp.linalg.norm(a - b) / (jnp.linalg.norm(b) + 1e-30))

    assert out.shape == (B, C, IM_H, IM_W)
    assert bool(jnp.all(jnp.isfinite(out)))
    assert rel_err(out, ref_q) < 1e-3, f"kernel vs quantized ref: {rel_err(out, ref_q)}"
    assert rel_err(out, ref_f32) < 3e-2, f"kernel vs f32 pipeline ref: {rel_err(out, ref_f32)}"
    print("KERNEL_OK")
</pallas_src>

<mosaic_0001>
module attributes {stable_mosaic.version = 11 : i64} {
  func.func @_fbp_matmul_kernel(%arg0: i32, %arg1: i32, %arg2: memref<8x128xbf16, #tpu.memory_space<vmem>>, %arg3: memref<128x256xbf16, #tpu.memory_space<vmem>>, %arg4: memref<8x256xf32, #tpu.memory_space<vmem>>) attributes {dimension_semantics = [#tpu.dimension_semantics<parallel>, #tpu.dimension_semantics<arbitrary>], iteration_bounds = array<i64: 1, 1>, scalar_prefetch = 0 : i64, scratch_operands = 0 : i64, tpu.core_type = #tpu.core_type<tc>, window_params = [{pipeline_mode = #tpu.pipeline_mode<synchronous>, transform_indices = @transform_0, window_bounds = array<i64: 8, 128>}, {transform_indices = @transform_1, window_bounds = array<i64: 128, 256>}, {transform_indices = @transform_2, window_bounds = array<i64: 8, 256>}]} {
    %c128_i32 = arith.constant 128 : i32
    %0 = arith.muli %arg1, %c128_i32 : i32
    %1 = tpu.assume_multiple %0, 128 : i32
    %c0 = arith.constant 0 : index
    %2 = arith.index_cast %1 : i32 to index
    %3 = vector.load %arg2[%c0, %2] : memref<8x128xbf16, #tpu.memory_space<vmem>>, vector<8x128xbf16>
    %c0_0 = arith.constant 0 : index
    %c0_1 = arith.constant 0 : index
    %4 = vector.load %arg3[%c0_0, %c0_1] : memref<128x256xbf16, #tpu.memory_space<vmem>>, vector<128x256xbf16>
    %cst = arith.constant dense<0.000000e+00> : vector<8x256xf32>
    %5 = tpu.matmul %3, %4, %cst {dimension_numbers = #tpu.dot_dimension_numbers<[1], [0], [0], [1], [0, 0, 1, 1], [], []>} : vector<8x128xbf16>, vector<128x256xbf16>, vector<8x256xf32> -> vector<8x256xf32>
    %c0_i32 = arith.constant 0 : i32
    %6 = arith.cmpi eq, %arg1, %c0_i32 : i32
    %7 = arith.extui %6 : i1 to i32
    %c0_i32_2 = arith.constant 0 : i32
    %8 = arith.cmpi ne, %7, %c0_i32_2 : i32
    scf.if %8 {
      %c0_5 = arith.constant 0 : index
      %c0_6 = arith.constant 0 : index
      %12 = vector.load %arg4[%c0_5, %c0_6] : memref<8x256xf32, #tpu.memory_space<vmem>>, vector<8x256xf32>
      tpu.vector_store %arg4[%c0_5, %c0_6], %5 {strides = array<i32>} : memref<8x256xf32, #tpu.memory_space<vmem>>, vector<8x256xf32>,
    } else {
    }
    %c0_i32_3 = arith.constant 0 : i32
    %9 = arith.cmpi sgt, %arg1, %c0_i32_3 : i32
    %10 = arith.extui %9 : i1 to i32
    %c0_i32_4 = arith.constant 0 : i32
    %11 = arith.cmpi ne, %10, %c0_i32_4 : i32
    scf.if %11 {
      %c0_5 = arith.constant 0 : index
      %c0_6 = arith.constant 0 : index
      %12 = vector.load %arg4[%c0_5, %c0_6] : memref<8x256xf32, #tpu.memory_space<vmem>>, vector<8x256xf32>
      %13 = arith.addf %12, %5 : vector<8x256xf32>
      %c0_7 = arith.constant 0 : index
      %c0_8 = arith.constant 0 : index
      %14 = vector.load %arg4[%c0_7, %c0_8] : memref<8x256xf32, #tpu.memory_space<vmem>>, vector<8x256xf32>
      tpu.vector_store %arg4[%c0_7, %c0_8], %13 {strides = array<i32>} : memref<8x256xf32, #tpu.memory_space<vmem>>, vector<8x256xf32>,
    } else {
    }
    return
  }
  func.func @transform_0(%arg0: i32, %arg1: i32) -> (i32, i32) {
    %c0_i32 = arith.constant 0 : i32
    %c0_i32_0 = arith.constant 0 : i32
    %c0_i32_1 = arith.constant 0 : i32
    return %c0_i32, %c0_i32_0 : i32, i32
  }
  func.func @transform_1(%arg0: i32, %arg1: i32) -> (i32, i32) {
    %c0_i32 = arith.constant 0 : i32
    return %arg1, %arg0 : i32, i32
  }
  func.func @transform_2(%arg0: i32, %arg1: i32) -> (i32, i32) {
    %c0_i32 = arith.constant 0 : i32
    %c0_i32_0 = arith.constant 0 : i32
    return %c0_i32, %arg0 : i32, i32
  }
}

</mosaic_0001>

<bundles_post_ra>
// kernel: tpu_custom_call.1
= control target key start
LH: loop header
LB: loop body
LE: loop exit
PB: predicated region body
PF: predicated region fallthrough
CT: control target
= control target key end

     0   :  { %7 = vsyncpa [#allocation3], 0  ;;  %s398_s0 = inlined_call_operand.hbm [shape: bf16[8,128], index: 0, kind: input, shape index: {}]   ;;  %s399_s1 = inlined_call_operand.hbm [shape: bf16[128,256], index: 1, kind: input, shape index: {}]   ;;  %s400_s2 = inlined_call_operand.hbm [shape: f32[8,256], index: 2, kind: output, shape index: {}]  }
   0x1   :  { %8 = vsyncpa [#allocation6], 0 }
   0x2   :  { %9 = vsyncpa [#allocation4], 0  ;;  %s15_s11 = sshll.u32 %s398_s0, 4  ;;  %s369_s12 = smov [#allocation2]   ;;  %s16_s11 = int_to_ptr.hbm [resolvable:$true] %s15_s11 }
   0x3   :  { %s17_s13 = sshll.u32 %s369_s12, 4  ;;  %s25_s16 = sshll.u32 %s399_s1, 4  ;;  %s18_s13 = int_to_ptr.vmem [resolvable:$true] %s17_s13  ;;  %s26_s16 = int_to_ptr.hbm [resolvable:$true] %s25_s16 }
   0x4   :  { %20 = dma.hbm_to_vmem [thread:$0]  %s16_s11, 64, %s18_s13, [#allocation3]  }
   0x5   :  { %s370_s17 = smov [#allocation5]   ;;  %s371_s19 = smov 128  }
   0x6   :  { %s27_s18 = sshll.u32 %s370_s17, 4  ;;  %s372_s20 = smov 8   ;;  %s28_s18 = int_to_ptr.vmem [resolvable:$true] %s27_s18 }
   0x7   :  { %33 = dma.hbm_to_vmem [thread:$0]  %s26_s16, 2048, %s28_s18, [#allocation6], %s371_s19, %s371_s19, %s372_s20  }
   0x8   :  { %363 = dma.done.wait [#allocation3], 64  }
   0x9   :  { %364 = vsyncadd [#allocation3], 4294967232 }
   0xa   :  { %365 = dma.done.wait [#allocation6], 2048  }
   0xb   :  { %366 = vsyncadd [#allocation6], 4294965248  ;;  %v264_v0 = vld [vmem:[#allocation5 + $0x70] sm:$0xf]  ;;  %v285_v1 = vld [vmem:[#allocation5 + $0x74] sm:$0xf0] }
   0xc   :  { %v284_v2 = vld [vmem:[#allocation5 + $0x74] sm:$0xf]  ;;  %v265_v3 = vor.u32 %v285_v1, %v264_v0  ;;  %v266_v4 = vld [vmem:[#allocation5 + $0x78] sm:$0xf0]  ;;  %v256_v5 = vld [vmem:[#allocation5 + $0x60] sm:$0xf] }
   0xd   :  { %v283_v6 = vld [vmem:[#allocation5 + $0x64] sm:$0xf0]  ;;  %v269_v7 = vor.u32 %v284_v2, %v266_v4  ;;  %v282_v8 = vld [vmem:[#allocation5 + $0x64] sm:$0xf]  ;;  %v258_v9 = vld [vmem:[#allocation5 + $0x68] sm:$0xf0] }
   0xe   :  { %144 = vmatpush.bf16.msra.mxu0 %v265_v3  ;;  %v257_v10 = vor.u32 %v283_v6, %v256_v5  ;;  %v261_v11 = vor.u32 %v282_v8, %v258_v9  ;;  %v248_v12 = vld [vmem:[#allocation5 + $0x50] sm:$0xf]  ;;  %v281_v13 = vld [vmem:[#allocation5 + $0x54] sm:$0xf0]  ;;  %v280_v14 = vld [vmem:[#allocation5 + $0x54] sm:$0xf] }
   0xf   :  { %157 = vmatpush.bf16.msra.mxu1 %v269_v7  ;;  %v250_v15 = vld [vmem:[#allocation5 + $0x58] sm:$0xf0]  ;;  %v249_v16 = vor.u32 %v281_v13, %v248_v12  ;;  %v240_v18 = vld [vmem:[#allocation5 + $0x40] sm:$0xf]  ;;  %v279_v19 = vld [vmem:[#allocation5 + $0x44] sm:$0xf0] }
  0x10   :  { %v253_v17 = vor.u32 %v280_v14, %v250_v15  ;;  %v278_v20 = vld [vmem:[#allocation5 + $0x44] sm:$0xf]  ;;  %v242_v21 = vld [vmem:[#allocation5 + $0x48] sm:$0xf0]  ;;  %v241_v22 = vor.u32 %v279_v19, %v240_v18  ;;  %v232_v24 = vld [vmem:[#allocation5 + $0x30] sm:$0xf] }
  0x11   :  { %v245_v23 = vor.u32 %v278_v20, %v242_v21  ;;  %v277_v25 = vld [vmem:[#allocation5 + $0x34] sm:$0xf0]  ;;  %v276_v26 = vld [vmem:[#allocation5 + $0x34] sm:$0xf]  ;;  %v234_v27 = vld [vmem:[#allocation5 + $0x38] sm:$0xf0] }
  0x12   :  { %145 = vmatpush.bf16.msra.mxu0 %v257_v10  ;;  %v233_v28 = vor.u32 %v277_v25, %v232_v24  ;;  %v237_v29 = vor.u32 %v276_v26, %v234_v27  ;;  %v224_v30 = vld [vmem:[#allocation5 + $0x20] sm:$0xf]  ;;  %v275_v31 = vld [vmem:[#allocation5 + $0x24] sm:$0xf0]  ;;  %v274_v32 = vld [vmem:[#allocation5 + $0x24] sm:$0xf] }
  0x13   :  { %158 = vmatpush.bf16.msra.mxu1 %v261_v11  ;;  %v226_v33 = vld [vmem:[#allocation5 + $0x28] sm:$0xf0]  ;;  %v225_v34 = vor.u32 %v275_v31, %v224_v30  ;;  %v216_v36 = vld [vmem:[#allocation5 + $0x10] sm:$0xf]  ;;  %v273_v37 = vld [vmem:[#allocation5 + $0x14] sm:$0xf0] }
  0x14   :  { %v229_v35 = vor.u32 %v274_v32, %v226_v33  ;;  %v272_v38 = vld [vmem:[#allocation5 + $0x14] sm:$0xf]  ;;  %v218_v39 = vld [vmem:[#allocation5 + $0x18] sm:$0xf0]  ;;  %v217_v40 = vor.u32 %v273_v37, %v216_v36  ;;  %v208_v42 = vld [vmem:[#allocation5] sm:$0xf] }
  0x15   :  { %v221_v41 = vor.u32 %v272_v38, %v218_v39  ;;  %v271_v43 = vld [vmem:[#allocation5 + $0x4] sm:$0xf0]  ;;  %v270_v44 = vld [vmem:[#allocation5 + $0x4] sm:$0xf]  ;;  %v210_v45 = vld [vmem:[#allocation5 + $0x8] sm:$0xf0] }
  0x16   :  { %146 = vmatpush.bf16.msra.mxu0 %v249_v16  ;;  %v209_v46 = vor.u32 %v271_v43, %v208_v42  ;;  %v213_v47 = vor.u32 %v270_v44, %v210_v45  ;;  %v47_v48 = vld [vmem:[#allocation2] sm:$0xf]  ;;  %s373_s0 = smov [#allocation7]   ;;  %s193_s23 = sshll.u32 %s400_s2, 4  ;;  %s194_s23 = int_to_ptr.hbm [resolvable:$true] %s193_s23 }
  0x17   :  { %159 = vmatpush.bf16.msra.mxu1 %v253_v17  ;;  %s191_s1 = sshll.u32 %s373_s0, 4  ;;  %s192_s1 = int_to_ptr.vmem [resolvable:$true] %s191_s1 }
  0x1a   :  { %147 = vmatpush.bf16.msra.mxu0 %v241_v22 }
  0x1b   :  { %160 = vmatpush.bf16.msra.mxu1 %v245_v23 }
  0x1e   :  { %148 = vmatpush.bf16.msra.mxu0 %v233_v28 }
  0x1f   :  { %161 = vmatpush.bf16.msra.mxu1 %v237_v29 }
  0x22   :  { %149 = vmatpush.bf16.msra.mxu0 %v225_v34 }
  0x23   :  { %162 = vmatpush.bf16.msra.mxu1 %v229_v35 }
  0x26   :  { %150 = vmatpush.bf16.msra.mxu0 %v217_v40 }
  0x27   :  { %163 = vmatpush.bf16.msra.mxu1 %v221_v41 }
  0x2a   :  { %151 = vmatpush.bf16.msra.mxu0 %v209_v46 }
  0x2b   :  { %164 = vmatpush.bf16.msra.mxu1 %v213_v47 }
  0x2d   :  { %152 = vmatmul.bf16.vlgmr.msra.gmra.mxu0 %v47_v48 }
  0x2e   :  { %165 = vmatmul.bf16.vlgmr.msra.gmra.mxu1 %v47_v48 }
  0xaa   :  { %v153_v49 = vpop.f32.mrf.mxu0 }
  0xab   :  { %174 = vst [vmem:[#allocation7] sm:$0xff] %v153_v49  ;;  %v166_v50 = vpop.f32.mrf.mxu1 }
  0xac   :  { %175 = vst [vmem:[#allocation7 + $0x8] sm:$0xff] %v166_v50 }
  0xad   :  { %196 = dma.vmem_to_hbm [thread:$0]  %s192_s1, 256, %s194_s23, [#allocation4]  }
  0xb2   :  { %v155_v51 = vpop.f32.mrf.mxu0 }
  0xb3   :  { %v168_v52 = vpop.f32.mrf.mxu1 }
  0xb4   :  { %367 = dma.done.wait [#allocation4], 256  }
  0xb5   :  { %368 = vsyncadd [#allocation4], 4294967040 }
  0xb6   :  { %201 = vsyncpa [#allocation3], 1 }
  0xb7   :  { %202 = vsyncpa [#allocation6], 1 }
  0xb8   :  { %203 = vsyncpa [#allocation4], 1 }

</bundles_post_ra>
